<compile_context>
chip_gen: v7x
topology: tpu7x:2x2x1
jax: 0.10.0
libtpu: 0.0.40
codegen_flags: <defaults>
</compile_context>

<pallas_src>
import functools

import jax
import jax.numpy as jnp
from jax import lax
from jax.experimental import pallas as pl
from jax.experimental.pallas import tpu as pltpu

_LANE = 128
_SUBLANE = 8
_MAX_BLOCK_ROWS = 8192   # (8192, 128) f32 block = 4 MiB per input per buffer


def _iou_kernel(x_ref, t_ref, out_ref, acc_i_ref, acc_t_ref, *,
                block_rows, valid_rows_last, truncate_targets):
    j = pl.program_id(0)
    nb = pl.num_programs(0)

    @pl.when(j == 0)
    def _():
        acc_i_ref[...] = jnp.zeros_like(acc_i_ref)
        acc_t_ref[...] = jnp.zeros_like(acc_t_ref)

    xv = x_ref[...].astype(jnp.float32)
    # sigmoid(x) = 0.5 * tanh(x / 2) + 0.5  -> single EUP transcendental.
    x = 0.5 * jnp.tanh(0.5 * xv) + 0.5
    if truncate_targets:
        # torch's targets.long(): truncate toward zero, then back to f32.
        t = t_ref[...].astype(jnp.int32).astype(jnp.float32)
    else:
        t = t_ref[...].astype(jnp.float32)

    n_sub = block_rows // _SUBLANE
    is_last = j == nb - 1

    def _accumulate(prod, summ):
        # Sublane-aligned fold of the whole block into one vreg accumulator:
        # (block_rows,128) -> (block_rows/8, 8, 128) -> sum over leading axis.
        acc_i_ref[...] += prod.reshape(n_sub, _SUBLANE, _LANE).sum(axis=0)
        acc_t_ref[...] += summ.reshape(n_sub, _SUBLANE, _LANE).sum(axis=0)

    if valid_rows_last < block_rows:
        # Only the final grid block can be partial; every other step is the
        # mask-free hot path.
        @pl.when(jnp.logical_not(is_last))
        def _():
            _accumulate(x * t, x + t)

        @pl.when(is_last)
        def _():
            row = lax.broadcasted_iota(jnp.int32, (block_rows, _LANE), 0)
            mask = row < valid_rows_last
            _accumulate(jnp.where(mask, x * t, 0.0),
                        jnp.where(mask, x + t, 0.0))
    else:
        _accumulate(x * t, x + t)

    @pl.when(is_last)
    def _():
        out_ref[0, 0] = jnp.sum(acc_i_ref[...])   # intersection partial
        out_ref[0, 1] = jnp.sum(acc_t_ref[...])   # total partial


def _tail_terms(x_tail, t_tail, truncate_targets):
    """Plain-JAX handling of the <1024-element, non-tile-aligned tail."""
    x = jax.nn.sigmoid(x_tail.astype(jnp.float32))
    if truncate_targets:
        t = t_tail.astype(jnp.int32).astype(jnp.float32)
    else:
        t = t_tail.astype(jnp.float32)
    return jnp.sum(x * t), jnp.sum(x + t)


def iou_loss(inputs, targets, smooth=1.0):
    """Pallas implementation of IoULoss.forward(inputs, targets, smooth)."""
    n = inputs.size
    xf = inputs.reshape(-1)
    tf = targets.reshape(-1)

    truncate_targets = bool(jnp.issubdtype(targets.dtype, jnp.floating))

    # Bulk = all full (8,128) tiles; tail (< 1024 elements) handled in JAX.
    rows8 = (n // (_SUBLANE * _LANE)) * _SUBLANE
    n_bulk = rows8 * _LANE

    intersection = jnp.float32(0.0)
    total = jnp.float32(0.0)

    if rows8 > 0:
        if n_bulk != n:
            x2 = xf[:n_bulk].reshape(rows8, _LANE)
            t2 = tf[:n_bulk].reshape(rows8, _LANE)
        else:
            x2 = xf.reshape(rows8, _LANE)
            t2 = tf.reshape(rows8, _LANE)

        block_rows = min(_MAX_BLOCK_ROWS, rows8)
        nb = pl.cdiv(rows8, block_rows)
        valid_rows_last = rows8 - (nb - 1) * block_rows  # multiple of 8

        kernel = functools.partial(
            _iou_kernel,
            block_rows=block_rows,
            valid_rows_last=valid_rows_last,
            truncate_targets=truncate_targets,
        )

        bytes_accessed = (x2.size * x2.dtype.itemsize
                          + t2.size * t2.dtype.itemsize + 8)
        cost = pl.CostEstimate(flops=7 * n_bulk, transcendentals=n_bulk,
                               bytes_accessed=bytes_accessed)

        partial = pl.pallas_call(
            kernel,
            out_shape=jax.ShapeDtypeStruct((1, 2), jnp.float32),
            grid_spec=pltpu.PrefetchScalarGridSpec(
                num_scalar_prefetch=0,
                grid=(nb,),
                in_specs=[
                    pl.BlockSpec((block_rows, _LANE), lambda j: (j, 0)),
                    pl.BlockSpec((block_rows, _LANE), lambda j: (j, 0)),
                ],
                out_specs=pl.BlockSpec(
                    (1, 2), lambda j: (0, 0),
                    memory_space=pltpu.MemorySpace.SMEM,
                ),
                scratch_shapes=[
                    pltpu.VMEM((_SUBLANE, _LANE), jnp.float32),
                    pltpu.VMEM((_SUBLANE, _LANE), jnp.float32),
                ],
            ),
            compiler_params=pltpu.CompilerParams(
                dimension_semantics=("arbitrary",),
                vmem_limit_bytes=48 * 1024 * 1024,
            ),
            cost_estimate=cost,
        )(x2, t2)

        intersection = partial[0, 0]
        total = partial[0, 1]

    if n_bulk != n:
        i_tail, t_tail_sum = _tail_terms(xf[n_bulk:], tf[n_bulk:],
                                         truncate_targets)
        intersection = intersection + i_tail
        total = total + t_tail_sum

    union = total - intersection
    smooth = jnp.float32(smooth)
    return 1.0 - (intersection + smooth) / (union + smooth)


def _iou_loss_ref(inputs, targets, smooth=1.0):
    """Plain-JAX reference mirroring the PyTorch module."""
    x = jax.nn.sigmoid(inputs.astype(jnp.float32)).reshape(-1)
    t = targets.astype(jnp.int32).astype(jnp.float32).reshape(-1)
    intersection = jnp.sum(x * t)
    total = jnp.sum(x + t)
    union = total - intersection
    return 1.0 - (intersection + smooth) / (union + smooth)


if __name__ == "__main__":
    key = jax.random.PRNGKey(0)
    k1, k2, k3, k4 = jax.random.split(key, 4)

    # Small shapes consistent with a segmentation logits/mask pair (NCHW).
    B, C, H, W = 2, 4, 16, 16
    inputs = jax.random.normal(k1, (B, C, H, W), dtype=jnp.float32)
    targets = jax.random.bernoulli(k2, p=0.5, shape=(B, C, H, W)).astype(
        jnp.float32
    )

    loss = iou_loss(inputs, targets, smooth=1.0)
    loss = jax.block_until_ready(loss)
    ref = _iou_loss_ref(inputs, targets, smooth=1.0)
    assert jnp.allclose(loss, ref, atol=1e-5, rtol=1e-5), (loss, ref)

    # Second check: non-128-aligned size (exercises the JAX tail path) with
    # integer targets (exercises the no-truncation dispatch).
    shape2 = (3, 5, 7, 11)   # 1155 elements -> 8 bulk rows + 131-elem tail
    inputs2 = jax.random.normal(k3, shape2, dtype=jnp.float32)
    targets2 = jax.random.bernoulli(k4, p=0.5, shape=shape2).astype(jnp.int32)

    loss2 = iou_loss(inputs2, targets2, smooth=1.0)
    loss2 = jax.block_until_ready(loss2)
    ref2 = _iou_loss_ref(inputs2, targets2, smooth=1.0)
    assert jnp.allclose(loss2, ref2, atol=1e-5, rtol=1e-5), (loss2, ref2)

    print("KERNEL_OK")
</pallas_src>

<mosaic_0001>
module attributes {stable_mosaic.version = 11 : i64} {
  func.func @_iou_kernel(%arg0: i32, %arg1: memref<16x128xf32, #tpu.memory_space<vmem>>, %arg2: memref<16x128xf32, #tpu.memory_space<vmem>>, %arg3: memref<1x2xf32, #tpu.memory_space<smem>>, %arg4: memref<8x128xf32, #tpu.memory_space<vmem>>, %arg5: memref<8x128xf32, #tpu.memory_space<vmem>>) attributes {dimension_semantics = [#tpu.dimension_semantics<arbitrary>], iteration_bounds = array<i64: 1>, scalar_prefetch = 0 : i64, scratch_operands = 2 : i64, tpu.core_type = #tpu.core_type<tc>, window_params = [{transform_indices = @transform_0, window_bounds = array<i64: 16, 128>}, {transform_indices = @transform_1, window_bounds = array<i64: 16, 128>}, {transform_indices = @transform_2, window_bounds = array<i64: 1, 2>}]} {
    %c0_i32 = arith.constant 0 : i32
    %0 = arith.cmpi eq, %arg0, %c0_i32 : i32
    %1 = arith.extui %0 : i1 to i32
    %c0_i32_0 = arith.constant 0 : i32
    %2 = arith.cmpi ne, %1, %c0_i32_0 : i32
    scf.if %2 {
      %cst_18 = arith.constant 0.000000e+00 : f32
      %29 = vector.broadcast %cst_18 : f32 to vector<8x128xf32>
      %c0_19 = arith.constant 0 : index
      %c0_20 = arith.constant 0 : index
      %30 = vector.load %arg4[%c0_19, %c0_20] : memref<8x128xf32, #tpu.memory_space<vmem>>, vector<8x128xf32>
      tpu.vector_store %arg4[%c0_19, %c0_20], %29 {strides = array<i32>} : memref<8x128xf32, #tpu.memory_space<vmem>>, vector<8x128xf32>,
      %cst_21 = arith.constant 0.000000e+00 : f32
      %31 = vector.broadcast %cst_21 : f32 to vector<8x128xf32>
      %c0_22 = arith.constant 0 : index
      %c0_23 = arith.constant 0 : index
      %32 = vector.load %arg5[%c0_22, %c0_23] : memref<8x128xf32, #tpu.memory_space<vmem>>, vector<8x128xf32>
      tpu.vector_store %arg5[%c0_22, %c0_23], %31 {strides = array<i32>} : memref<8x128xf32, #tpu.memory_space<vmem>>, vector<8x128xf32>,
    } else {
    }
    %c0 = arith.constant 0 : index
    %c0_1 = arith.constant 0 : index
    %3 = vector.load %arg1[%c0, %c0_1] : memref<16x128xf32, #tpu.memory_space<vmem>>, vector<16x128xf32>
    %cst = arith.constant 5.000000e-01 : f32
    %4 = vector.broadcast %cst : f32 to vector<16x128xf32>
    %5 = arith.mulf %4, %3 : vector<16x128xf32>
    %6 = math.tanh %5 : vector<16x128xf32>
    %cst_2 = arith.constant 5.000000e-01 : f32
    %7 = vector.broadcast %cst_2 : f32 to vector<16x128xf32>
    %8 = arith.mulf %7, %6 : vector<16x128xf32>
    %cst_3 = arith.constant 5.000000e-01 : f32
    %9 = vector.broadcast %cst_3 : f32 to vector<16x128xf32>
    %10 = arith.addf %8, %9 : vector<16x128xf32>
    %c0_4 = arith.constant 0 : index
    %c0_5 = arith.constant 0 : index
    %11 = vector.load %arg2[%c0_4, %c0_5] : memref<16x128xf32, #tpu.memory_space<vmem>>, vector<16x128xf32>
    %12 = arith.fptosi %11 : vector<16x128xf32> to vector<16x128xi32>
    %13 = arith.sitofp %12 : vector<16x128xi32> to vector<16x128xf32>
    %c0_i32_6 = arith.constant 0 : i32
    %14 = arith.cmpi eq, %arg0, %c0_i32_6 : i32
    %15 = arith.mulf %10, %13 : vector<16x128xf32>
    %16 = arith.addf %10, %13 : vector<16x128xf32>
    %c0_7 = arith.constant 0 : index
    %c0_8 = arith.constant 0 : index
    %17 = vector.load %arg4[%c0_7, %c0_8] : memref<8x128xf32, #tpu.memory_space<vmem>>, vector<8x128xf32>
    %18 = vector.shape_cast %15 : vector<16x128xf32> to vector<2x8x128xf32>
    %cst_9 = arith.constant dense<0.000000e+00> : vector<8x128xf32>
    %19 = vector.multi_reduction <add>, %18, %cst_9 [0] : vector<2x8x128xf32> to vector<8x128xf32>
    %20 = arith.addf %17, %19 : vector<8x128xf32>
    %c0_10 = arith.constant 0 : index
    %c0_11 = arith.constant 0 : index
    %21 = vector.load %arg4[%c0_10, %c0_11] : memref<8x128xf32, #tpu.memory_space<vmem>>, vector<8x128xf32>
    tpu.vector_store %arg4[%c0_10, %c0_11], %20 {strides = array<i32>} : memref<8x128xf32, #tpu.memory_space<vmem>>, vector<8x128xf32>,
    %c0_12 = arith.constant 0 : index
    %c0_13 = arith.constant 0 : index
    %22 = vector.load %arg5[%c0_12, %c0_13] : memref<8x128xf32, #tpu.memory_space<vmem>>, vector<8x128xf32>
    %23 = vector.shape_cast %16 : vector<16x128xf32> to vector<2x8x128xf32>
    %cst_14 = arith.constant dense<0.000000e+00> : vector<8x128xf32>
    %24 = vector.multi_reduction <add>, %23, %cst_14 [0] : vector<2x8x128xf32> to vector<8x128xf32>
    %25 = arith.addf %22, %24 : vector<8x128xf32>
    %c0_15 = arith.constant 0 : index
    %c0_16 = arith.constant 0 : index
    %26 = vector.load %arg5[%c0_15, %c0_16] : memref<8x128xf32, #tpu.memory_space<vmem>>, vector<8x128xf32>
    tpu.vector_store %arg5[%c0_15, %c0_16], %25 {strides = array<i32>} : memref<8x128xf32, #tpu.memory_space<vmem>>, vector<8x128xf32>,
    %27 = arith.extui %14 : i1 to i32
    %c0_i32_17 = arith.constant 0 : i32
    %28 = arith.cmpi ne, %27, %c0_i32_17 : i32
    scf.if %28 {
      %c0_18 = arith.constant 0 : index
      %c0_19 = arith.constant 0 : index
      %29 = vector.load %arg4[%c0_18, %c0_19] : memref<8x128xf32, #tpu.memory_space<vmem>>, vector<8x128xf32>
      %30 = vector.shape_cast %29 : vector<8x128xf32> to vector<1x8x128xf32>
      %cst_20 = arith.constant dense<0.000000e+00> : vector<1xf32>
      %31 = vector.multi_reduction <add>, %30, %cst_20 [1, 2] : vector<1x8x128xf32> to vector<1xf32>
      %32 = vector.shape_cast %31 : vector<1xf32> to vector<1x1x1xf32>
      %33 = vector.extract %32[0, 0, 0] : f32 from vector<1x1x1xf32>
      %c0_21 = arith.constant 0 : index
      %c0_22 = arith.constant 0 : index
      %34 = memref.load %arg3[%c0_21, %c0_22] : memref<1x2xf32, #tpu.memory_space<smem>>
      memref.store %33, %arg3[%c0_21, %c0_22] : memref<1x2xf32, #tpu.memory_space<smem>>
      %c0_23 = arith.constant 0 : index
      %c0_24 = arith.constant 0 : index
      %35 = vector.load %arg5[%c0_23, %c0_24] : memref<8x128xf32, #tpu.memory_space<vmem>>, vector<8x128xf32>
      %36 = vector.shape_cast %35 : vector<8x128xf32> to vector<1x8x128xf32>
      %cst_25 = arith.constant dense<0.000000e+00> : vector<1xf32>
      %37 = vector.multi_reduction <add>, %36, %cst_25 [1, 2] : vector<1x8x128xf32> to vector<1xf32>
      %38 = vector.shape_cast %37 : vector<1xf32> to vector<1x1x1xf32>
      %39 = vector.extract %38[0, 0, 0] : f32 from vector<1x1x1xf32>
      %c0_26 = arith.constant 0 : index
      %c1 = arith.constant 1 : index
      %40 = memref.load %arg3[%c0_26, %c1] : memref<1x2xf32, #tpu.memory_space<smem>>
      memref.store %39, %arg3[%c0_26, %c1] : memref<1x2xf32, #tpu.memory_space<smem>>
    } else {
    }
    return
  }
  func.func @transform_0(%arg0: i32) -> (i32, i32) {
    %c0_i32 = arith.constant 0 : i32
    %c0_i32_0 = arith.constant 0 : i32
    return %arg0, %c0_i32 : i32, i32
  }
  func.func @transform_1(%arg0: i32) -> (i32, i32) {
    %c0_i32 = arith.constant 0 : i32
    %c0_i32_0 = arith.constant 0 : i32
    return %arg0, %c0_i32 : i32, i32
  }
  func.func @transform_2(%arg0: i32) -> (i32, i32) {
    %c0_i32 = arith.constant 0 : i32
    %c0_i32_0 = arith.constant 0 : i32
    %c0_i32_1 = arith.constant 0 : i32
    return %c0_i32, %c0_i32_0 : i32, i32
  }
}

</mosaic_0001>

<bundles_post_ra>
// kernel: tpu_custom_call.1
= control target key start
LH: loop header
LB: loop body
LE: loop exit
PB: predicated region body
PF: predicated region fallthrough
CT: control target
= control target key end

     0   :  { %7 = vsyncpa [#allocation5], 0  ;;  %s249_s0 = inlined_call_operand.hbm [shape: f32[16,128], index: 0, kind: input, shape index: {}]   ;;  %s250_s1 = inlined_call_operand.hbm [shape: f32[16,128], index: 1, kind: input, shape index: {}]   ;;  %s251_s2 = inlined_call_operand.hbm [shape: f32[1,2], index: 2, kind: output, shape index: {}]  }
   0x1   :  { %8 = vsyncpa [#allocation8], 0 }
   0x2   :  { %9 = vsyncpa [#allocation6], 0  ;;  %s193_s9 = smov [#allocation4]   ;;  %s133_s13 = scalar_lea.hbm %s249_s0, 256 }
   0x3   :  { %s15_s10 = sshll.u32 %s193_s9, 4  ;;  %p134_p0 = scmp.ne.s32.totalorder %s249_s0, %s133_s13  ;;  %s16_s10 = int_to_ptr.vmem [resolvable:$true] %s15_s10 }
   0x4   :  { %p137_p1 = scmp.lt.u32.totalorder %s133_s13, %s249_s0 }
   0x6   :  { %p139_p2 = pnand %p137_p1, %p134_p0 }
   0x8   :  { %142 = shalt.err (!%p139_p2)
}
   0x9   :  { %s143_s18 = scalar_lea.vmem %s16_s10, 256  ;;  %p148_p4 = scmp.lt.s32.totalorder %s16_s10, %s16_s10 }
   0xa   :  { %p144_p3 = scmp.ne.s32.totalorder %s16_s10, %s143_s18  ;;  %p149_p5 = scmp.lt.s32.totalorder %s143_s18, %s143_s18 }
   0xc   :  { %p150_p6 = por %p149_p5, %p148_p4 }
   0xe   :  { %p151_p7 = pnand %p150_p6, %p144_p3 }
  0x10   :  { %154 = shalt.err (!%p151_p7)
}
  0x11   :  { %s194_s19 = smov 128   ;;  %s195_s20 = smov 8  }
  0x12   :  { %21 = dma.hbm_to_vmem [thread:$0]  %s249_s0, 256, %s16_s10, [#allocation5], %s194_s19, %s194_s19, %s195_s20  }
  0x13   :  { %s196_s23 = smov [#allocation7]   ;;  %s155_s27 = scalar_lea.hbm %s250_s1, 256 }
  0x14   :  { %s27_s24 = sshll.u32 %s196_s23, 4  ;;  %p156_p8 = scmp.ne.s32.totalorder %s250_s1, %s155_s27  ;;  %s28_s24 = int_to_ptr.vmem [resolvable:$true] %s27_s24 }
  0x15   :  { %p159_p9 = scmp.lt.u32.totalorder %s155_s27, %s250_s1 }
  0x17   :  { %p161_p10 = pnand %p159_p9, %p156_p8 }
  0x19   :  { %164 = shalt.err (!%p161_p10)
}
  0x1a   :  { %s165_s4 = scalar_lea.vmem %s28_s24, 256  ;;  %p170_p12 = scmp.lt.s32.totalorder %s28_s24, %s28_s24 }
  0x1b   :  { %p166_p11 = scmp.ne.s32.totalorder %s28_s24, %s165_s4  ;;  %p171_p13 = scmp.lt.s32.totalorder %s165_s4, %s165_s4 }
  0x1d   :  { %p172_p0 = por %p171_p13, %p170_p12 }
  0x1f   :  { %p173_p1 = pnand %p172_p0, %p166_p11 }
  0x21   :  { %176 = shalt.err (!%p173_p1)
}
  0x22   :  { %33 = dma.hbm_to_vmem [thread:$0]  %s250_s1, 256, %s28_s24, [#allocation8], %s194_s19, %s194_s19, %s195_s20  }
  0x23   :  { %187 = dma.done.wait [#allocation5], 256  }
  0x24   :  { %188 = vsyncadd [#allocation5], 4294967040 }
  0x25   :  { %189 = dma.done.wait [#allocation8], 256  }
  0x26   :  { %190 = vsyncadd [#allocation8], 4294967040  ;;  %v46_v0 = vld [vmem:[#allocation4] sm:$0xff]  ;;  %v47_v1 = vld [vmem:[#allocation4 + $0x8] sm:$0xff]  ;;  %s177_s9 = scalar_lea.hbm %s251_s2, 16 }
  0x27   :  { %v48_v2 = vmul.f32 0.5, %v46_v0  ;;  %v49_v3 = vmul.f32 0.5, %v47_v1  ;;  %v56_v4 = vld [vmem:[#allocation7] sm:$0xff]  ;;  %v57_v5 = vld [vmem:[#allocation7 + $0x8] sm:$0xff]  ;;  %p178_p2 = scmp.ne.s32.totalorder %s251_s2, %s177_s9  ;;  %p181_p3 = scmp.lt.u32.totalorder %s177_s9, %s251_s2 }
  0x28   :  { %v116_v6 = vtrunc.f32 %v56_v4  ;;  %v118_v7 = vtrunc.f32 %v57_v5 }
  0x29   :  { %129 = vtanh.f32 %v48_v2  ;;  %p183_p4 = pnand %p181_p3, %p178_p2 }
  0x2a   :  { %131 = vtanh.f32 %v49_v3  ;;  %v117_v8 = vcvt.f32.s32 %v116_v6  ;;  %v119_v9 = vcvt.f32.s32 %v118_v7 }
  0x2c   :  { %v60_v13 = vcvt.s32.f32 %v117_v8  ;;  %v61_v15 = vcvt.s32.f32 %v119_v9 }
  0x33   :  { %v130_v10 = vpop.eup %129 }
  0x34   :  { %v132_v11 = vpop.eup %131  ;;  %v52_v12 = vmul.f32 0.5, %v130_v10 }
  0x35   :  { %v53_v14 = vmul.f32 0.5, %v132_v11 }
  0x36   :  { %v54_v16 = vadd.f32 0.5, %v52_v12 }
  0x37   :  { %v55_v17 = vadd.f32 0.5, %v53_v14 }
  0x38   :  { %v62_v18 = vmul.f32 %v60_v13, %v54_v16  ;;  %v64_v20 = vadd.f32 %v60_v13, %v54_v16 }
  0x39   :  { %v63_v19 = vmul.f32 %v61_v15, %v55_v17  ;;  %v65_v21 = vadd.f32 %v61_v15, %v55_v17 }
  0x3b   :  { %v67_v22 = vadd.f32 %v63_v19, %v62_v18  ;;  %v71_v23 = vadd.f32 %v65_v21, %v64_v20 }
  0x3d   :  { %78 = vadd.xlane.f32.xlu0 %v67_v22 }
  0x41   :  { %90 = vadd.xlane.f32.xlu0 %v71_v23 }
  0xca   :  { %v79_v24 = vpop.xlane.xlu0 %78 }
  0xcb   :  { %v80_v25 = vrot.slane %v79_v24, 4 }
  0xcd   :  { %v81_v26 = vadd.f32 %v80_v25, %v79_v24 }
  0xce   :  { %v91_v27 = vpop.xlane.xlu0 %90 }
  0xcf   :  { %v82_v28 = vrot.slane %v81_v26, 2  ;;  %v92_v29 = vrot.slane %v91_v27, 4 }
  0xd1   :  { %v93_v30 = vadd.f32 %v92_v29, %v91_v27  ;;  %v83_v31 = vadd.f32 %v82_v28, %v81_v26 }
  0xd3   :  { %v94_v32 = vrot.slane %v93_v30, 2  ;;  %v84_v33 = vrot.slane %v83_v31, 1 }
  0xd5   :  { %v95_v34 = vadd.f32 %v94_v32, %v93_v30  ;;  %v85_v35 = vadd.f32 %v84_v33, %v83_v31 }
  0xd7   :  { %120 = vpush %v85_v35  ;;  %v96_v36 = vrot.slane %v95_v34, 1 }
  0xd9   :  { %v97_v37 = vadd.f32 %v96_v36, %v95_v34 }
  0xdb   :  { %122 = vpush %v97_v37 }
 0x108   :  { %s121_s1 = spop %120 }
 0x109   :  { %88 = sst [smem:[#allocation9]] %s121_s1 }
 0x10c   :  { %s123_s6 = spop %122 }
 0x10d   :  { %100 = sst [smem:[#allocation9 + $0x1]] %s123_s6 }
 0x10e   :  { %186 = shalt.err (!%p183_p4)
}
 0x10f   :  { %s197_s14 = smov [#allocation9]  }
 0x110   :  { %108 = dma.smem_to_hbm %s197_s14, 16, %s251_s2, [#allocation6]  }
 0x111   :  { %191 = dma.done.wait [#allocation6], 16  }
 0x112   :  { %192 = vsyncadd [#allocation6], 4294967280 }
 0x113   :  { %112 = sfence }
 0x114   :  { %113 = vsyncpa [#allocation5], 1 }
 0x115   :  { %114 = vsyncpa [#allocation8], 1 }
 0x116   :  { %115 = vsyncpa [#allocation6], 1 }

</bundles_post_ra>
